<compile_context>
chip_gen: v5e
topology: v5e:2x2
jax: 0.10.0
libtpu: 0.0.40
codegen_flags: <defaults>
</compile_context>

<pallas_src>
import functools

import jax
import jax.numpy as jnp
from jax import lax
from jax.experimental import pallas as pl
from jax.experimental.pallas import tpu as pltpu


def _round_up(x, m):
    return (x + m - 1) // m * m


def _vmem_budget_bytes():
    """Generation-aware scoped-VMEM budget (leave headroom below physical)."""
    cap = 64 * 1024 * 1024
    try:
        info = pltpu.get_tpu_info()
        cap = getattr(info, "vmem_capacity_bytes", None) or cap
    except Exception:  # query unavailable (e.g. interpret/CPU) -> v7x-safe default
        pass
    return min(int(cap * 3 // 4), 96 * 1024 * 1024)


def _working_set_bytes(tb, dt, di, fc, o_pad, mm_itemsize):
    """Rough double-buffered VMEM working-set estimate for one grid step."""
    ws = 0
    ws += 2 * tb * dt * mm_itemsize               # text tile   (x2 buffers)
    ws += 2 * tb * di * mm_itemsize               # image tile  (x2 buffers)
    ws += 2 * dt * fc * o_pad * mm_itemsize       # text weight chunk
    ws += 2 * di * fc * o_pad * mm_itemsize       # image weight chunk
    ws += 2 * 2 * fc * o_pad * 4                  # bias chunks
    ws += 2 * tb * o_pad * 4                      # f32 output block
    ws += 3 * tb * fc * o_pad * 4                 # f32 intermediates (proj x2 + prod)
    return ws


def _choose_tiling(B, dt, di, F, o_pad, batch_tile, mm_itemsize, vmem_budget):
    # Batch tile: multiple of 8 sublanes; ensure >= 2 batch-grid steps when the
    # batch permits so the "parallel" axis feeds both v7x TensorCores.
    tb = min(batch_tile, _round_up(B, 8))
    while tb > 8 and _round_up(B, tb) // tb < 2:
        tb = _round_up(tb // 2, 8)

    # Factors per chunk: largest divisor of F whose fused N stays reasonable.
    divisors = [d for d in range(F, 0, -1) if F % d == 0]
    fc = next(d for d in divisors if d * o_pad <= max(4096, o_pad))

    # Shrink FC first, then TB, until the working set fits the VMEM budget.
    while _working_set_bytes(tb, dt, di, fc, o_pad, mm_itemsize) > vmem_budget:
        if fc > 1:
            fc = next(d for d in divisors if d < fc)
        elif tb > 8:
            tb = _round_up(tb // 2, 8)
        else:
            break
    return tb, _round_up(B, tb), fc


def _mfb_kernel(txt_ref, img_ref, wt_ref, bt_ref, wi_ref, bi_ref, out_ref,
                *, fact_dim, fc, o_pad):
    """One (batch-tile, factor-chunk) grid step.

    txt_ref/img_ref : (TB, D)           activation tiles (resident across chunks)
    wt_ref/wi_ref   : (D, FC*O_pad)     fused per-chunk weight tiles (matmul_dtype)
    bt_ref/bi_ref   : (1, FC*O_pad)     per-chunk bias tiles (f32)
    out_ref         : (TB, O_pad)       f32 output tile, doubles as accumulator
    """
    c = pl.program_id(1)

    # Wide-N MXU matmuls with f32 accumulation; bias add in f32.
    txt_proj = jnp.dot(txt_ref[...], wt_ref[...],
                       preferred_element_type=jnp.float32) + bt_ref[...]
    img_proj = jnp.dot(img_ref[...], wi_ref[...],
                       preferred_element_type=jnp.float32) + bi_ref[...]
    prod = txt_proj * img_proj                       # (TB, FC*O_pad), f32

    # Reduce the FC fused factors with static, 128-aligned lane slices.
    partial = prod[:, :o_pad]
    for k in range(1, fc):
        partial = partial + prod[:, k * o_pad:(k + 1) * o_pad]

    @pl.when(c == 0)
    def _():
        out_ref[...] = jnp.zeros_like(out_ref)

    out_ref[...] += partial                          # accumulate in-place (f32)

    @pl.when(c == pl.num_programs(1) - 1)
    def _():
        mean = out_ref[...] * (1.0 / fact_dim)       # (TB, O_pad), f32
        sq = jnp.sum(mean * mean, axis=1, keepdims=True)
        # F.normalize(p=2, dim=1): x / max(||x||, eps), eps=1e-12
        #   == x * rsqrt(max(sq, eps^2))   (EUP, not a VPU divide chain)
        scale = lax.rsqrt(jnp.maximum(sq, 1e-24))
        out_ref[...] = (mean * scale).astype(out_ref.dtype)


def mfb_fusion(text_embeddings, image_embeddings, params, *,
               fact_dim, output_dim,
               matmul_dtype=jnp.bfloat16, batch_tile=256):
    """params: wt (Dt, F*O), bt (1, F*O), wi (Di, F*O), bi (1, F*O).

    Weights are stored already transposed, so the kernel computes x @ W + b
    (equivalent to nn.Linear's x @ W.T + b).
    """
    B, Dt = text_embeddings.shape
    Bi, Di = image_embeddings.shape
    assert Bi == B
    F = fact_dim
    O = output_dim
    O_pad = _round_up(O, 128)

    mm_itemsize = jnp.dtype(matmul_dtype).itemsize
    vmem_budget = _vmem_budget_bytes()
    TB, B_pad, FC = _choose_tiling(B, Dt, Di, F, O_pad, batch_tile,
                                   mm_itemsize, vmem_budget)
    n_chunks = F // FC

    # Pad each per-factor column block of the weights / biases to a lane-dense
    # multiple of 128. Zero-padded columns produce zero projections, zero
    # products, zero mean entries, and do not change the L2 norm.
    def pad_cols(w, dtype):
        w = w.reshape(w.shape[0], F, O)
        if O_pad != O:
            w = jnp.pad(w, ((0, 0), (0, 0), (0, O_pad - O)))
        return w.reshape(w.shape[0], F * O_pad).astype(dtype)

    wt = pad_cols(params["wt"], matmul_dtype)            # pre-cast: half HBM traffic
    wi = pad_cols(params["wi"], matmul_dtype)
    bt = pad_cols(params["bt"].reshape(1, F * O), jnp.float32)
    bi = pad_cols(params["bi"].reshape(1, F * O), jnp.float32)

    # Pre-cast activations too (no in-kernel cast pass); pad batch rows.
    # Padded rows give mean=0 -> output 0 and are sliced off afterwards.
    txt = text_embeddings.astype(matmul_dtype)
    img = image_embeddings.astype(matmul_dtype)
    if B_pad != B:
        txt = jnp.pad(txt, ((0, B_pad - B), (0, 0)))
        img = jnp.pad(img, ((0, B_pad - B), (0, 0)))

    kernel = functools.partial(_mfb_kernel, fact_dim=F, fc=FC, o_pad=O_pad)
    NW = FC * O_pad

    out = pl.pallas_call(
        kernel,
        out_shape=jax.ShapeDtypeStruct((B_pad, O_pad), jnp.float32),
        grid_spec=pltpu.PrefetchScalarGridSpec(
            num_scalar_prefetch=0,
            grid=(B_pad // TB, n_chunks),
            in_specs=[
                pl.BlockSpec((TB, Dt), lambda b, c: (b, 0)),    # text tile (chunk-resident)
                pl.BlockSpec((TB, Di), lambda b, c: (b, 0)),    # image tile (chunk-resident)
                pl.BlockSpec((Dt, NW), lambda b, c: (0, c)),    # fused text weight chunk
                pl.BlockSpec((1, NW), lambda b, c: (0, c)),     # fused text bias chunk
                pl.BlockSpec((Di, NW), lambda b, c: (0, c)),    # fused image weight chunk
                pl.BlockSpec((1, NW), lambda b, c: (0, c)),     # fused image bias chunk
            ],
            out_specs=pl.BlockSpec((TB, O_pad), lambda b, c: (b, 0)),
        ),
        compiler_params=pltpu.CompilerParams(
            dimension_semantics=("parallel", "arbitrary"),
            vmem_limit_bytes=int(vmem_budget)),
    )(txt, img, wt, bt, wi, bi)

    return out[:B, :O]


def mfb_fusion_ref(text_embeddings, image_embeddings, params, *, fact_dim, output_dim):
    """Pure-JAX reference (f32) for correctness checking."""
    img_proj = image_embeddings @ params["wi"] + params["bi"]
    txt_proj = text_embeddings @ params["wt"] + params["bt"]
    mfb = img_proj * txt_proj
    mfb = mfb.reshape(-1, fact_dim, output_dim).mean(axis=1)
    norm = jnp.sqrt(jnp.sum(mfb * mfb, axis=1, keepdims=True))
    return mfb / jnp.maximum(norm, 1e-12)


def _make_case(key, B, text_dim, image_dim, fact_dim, output_dim):
    k_txt, k_img, k_wt, k_bt, k_wi, k_bi = jax.random.split(key, 6)
    text = jax.random.normal(k_txt, (B, text_dim), jnp.float32)
    image = jax.random.normal(k_img, (B, image_dim), jnp.float32)
    params = {
        "wt": jax.random.normal(k_wt, (text_dim, fact_dim * output_dim), jnp.float32) * 0.05,
        "bt": jax.random.normal(k_bt, (1, fact_dim * output_dim), jnp.float32) * 0.05,
        "wi": jax.random.normal(k_wi, (image_dim, fact_dim * output_dim), jnp.float32) * 0.05,
        "bi": jax.random.normal(k_bi, (1, fact_dim * output_dim), jnp.float32) * 0.05,
    }
    return text, image, params


if __name__ == "__main__":
    key = jax.random.PRNGKey(0)
    k0, k1 = jax.random.split(key)

    # Case 1: small forward-consistent shapes (single grid step, padded O).
    B, image_dim, text_dim, fact_dim, output_dim = 2, 32, 32, 4, 32
    text, image, params = _make_case(k0, B, text_dim, image_dim, fact_dim, output_dim)
    ref = mfb_fusion_ref(text, image, params, fact_dim=fact_dim, output_dim=output_dim)

    # f32 MXU path: tight check against the f32 reference.
    out_f32 = mfb_fusion(text, image, params, fact_dim=fact_dim, output_dim=output_dim,
                         matmul_dtype=jnp.float32)
    out_f32 = jax.block_until_ready(out_f32)
    assert out_f32.shape == (B, output_dim)
    assert jnp.allclose(out_f32, ref, atol=1e-4, rtol=1e-4)

    # bf16 MXU path (default, performance config): loose check.
    out_bf16 = mfb_fusion(text, image, params, fact_dim=fact_dim, output_dim=output_dim,
                          matmul_dtype=jnp.bfloat16)
    out_bf16 = jax.block_until_ready(out_bf16)
    assert out_bf16.shape == (B, output_dim)
    assert jnp.allclose(out_bf16, ref, atol=5e-2, rtol=5e-2)

    # Case 2: exercises batch padding + multiple batch-grid steps.
    B2, image_dim2, text_dim2, fact_dim2, output_dim2 = 24, 48, 40, 3, 96
    text2, image2, params2 = _make_case(k1, B2, text_dim2, image_dim2, fact_dim2, output_dim2)
    ref2 = mfb_fusion_ref(text2, image2, params2, fact_dim=fact_dim2, output_dim=output_dim2)
    out2 = mfb_fusion(text2, image2, params2, fact_dim=fact_dim2, output_dim=output_dim2,
                      matmul_dtype=jnp.float32, batch_tile=16)
    out2 = jax.block_until_ready(out2)
    assert out2.shape == (B2, output_dim2)
    assert jnp.allclose(out2, ref2, atol=1e-4, rtol=1e-4)

    print("KERNEL_OK")
</pallas_src>

<mosaic_0001>
module attributes {stable_mosaic.version = 11 : i64} {
  func.func @_mfb_kernel(%arg0: i32, %arg1: i32, %arg2: memref<8x32xf32, #tpu.memory_space<vmem>>, %arg3: memref<8x32xf32, #tpu.memory_space<vmem>>, %arg4: memref<32x512xf32, #tpu.memory_space<vmem>>, %arg5: memref<1x512xf32, #tpu.memory_space<vmem>>, %arg6: memref<32x512xf32, #tpu.memory_space<vmem>>, %arg7: memref<1x512xf32, #tpu.memory_space<vmem>>, %arg8: memref<8x128xf32, #tpu.memory_space<vmem>>) attributes {dimension_semantics = [#tpu.dimension_semantics<parallel>, #tpu.dimension_semantics<arbitrary>], iteration_bounds = array<i64: 1, 1>, scalar_prefetch = 0 : i64, scratch_operands = 0 : i64, tpu.core_type = #tpu.core_type<tc>, window_params = [{transform_indices = @transform_0, window_bounds = array<i64: 8, 32>}, {transform_indices = @transform_1, window_bounds = array<i64: 8, 32>}, {transform_indices = @transform_2, window_bounds = array<i64: 32, 512>}, {transform_indices = @transform_3, window_bounds = array<i64: 1, 512>}, {transform_indices = @transform_4, window_bounds = array<i64: 32, 512>}, {transform_indices = @transform_5, window_bounds = array<i64: 1, 512>}, {transform_indices = @transform_6, window_bounds = array<i64: 8, 128>}]} {
    %c0 = arith.constant 0 : index
    %c0_0 = arith.constant 0 : index
    %0 = vector.load %arg2[%c0, %c0_0] : memref<8x32xf32, #tpu.memory_space<vmem>>, vector<8x32xf32>
    %c0_1 = arith.constant 0 : index
    %c0_2 = arith.constant 0 : index
    %1 = vector.load %arg4[%c0_1, %c0_2] : memref<32x512xf32, #tpu.memory_space<vmem>>, vector<32x512xf32>
    %cst = arith.constant dense<0.000000e+00> : vector<8x512xf32>
    %2 = tpu.matmul %0, %1, %cst {dimension_numbers = #tpu.dot_dimension_numbers<[1], [0], [0], [1], [0, 0, 1, 1], [], []>} : vector<8x32xf32>, vector<32x512xf32>, vector<8x512xf32> -> vector<8x512xf32>
    %c0_3 = arith.constant 0 : index
    %c0_4 = arith.constant 0 : index
    %3 = vector.load %arg5[%c0_3, %c0_4] : memref<1x512xf32, #tpu.memory_space<vmem>>, vector<1x512xf32>
    %4 = vector.broadcast %3 : vector<1x512xf32> to vector<8x512xf32>
    %5 = arith.addf %2, %4 : vector<8x512xf32>
    %c0_5 = arith.constant 0 : index
    %c0_6 = arith.constant 0 : index
    %6 = vector.load %arg3[%c0_5, %c0_6] : memref<8x32xf32, #tpu.memory_space<vmem>>, vector<8x32xf32>
    %c0_7 = arith.constant 0 : index
    %c0_8 = arith.constant 0 : index
    %7 = vector.load %arg6[%c0_7, %c0_8] : memref<32x512xf32, #tpu.memory_space<vmem>>, vector<32x512xf32>
    %cst_9 = arith.constant dense<0.000000e+00> : vector<8x512xf32>
    %8 = tpu.matmul %6, %7, %cst_9 {dimension_numbers = #tpu.dot_dimension_numbers<[1], [0], [0], [1], [0, 0, 1, 1], [], []>} : vector<8x32xf32>, vector<32x512xf32>, vector<8x512xf32> -> vector<8x512xf32>
    %c0_10 = arith.constant 0 : index
    %c0_11 = arith.constant 0 : index
    %9 = vector.load %arg7[%c0_10, %c0_11] : memref<1x512xf32, #tpu.memory_space<vmem>>, vector<1x512xf32>
    %10 = vector.broadcast %9 : vector<1x512xf32> to vector<8x512xf32>
    %11 = arith.addf %8, %10 : vector<8x512xf32>
    %12 = arith.mulf %5, %11 : vector<8x512xf32>
    %13 = vector.extract_strided_slice %12 {offsets = [0, 0], sizes = [8, 128], strides = [1, 1]} : vector<8x512xf32> to vector<8x128xf32>
    %14 = vector.extract_strided_slice %12 {offsets = [0, 128], sizes = [8, 128], strides = [1, 1]} : vector<8x512xf32> to vector<8x128xf32>
    %15 = arith.addf %13, %14 : vector<8x128xf32>
    %16 = vector.extract_strided_slice %12 {offsets = [0, 256], sizes = [8, 128], strides = [1, 1]} : vector<8x512xf32> to vector<8x128xf32>
    %17 = arith.addf %15, %16 : vector<8x128xf32>
    %18 = vector.extract_strided_slice %12 {offsets = [0, 384], sizes = [8, 128], strides = [1, 1]} : vector<8x512xf32> to vector<8x128xf32>
    %19 = arith.addf %17, %18 : vector<8x128xf32>
    %c0_i32 = arith.constant 0 : i32
    %20 = arith.cmpi eq, %arg1, %c0_i32 : i32
    %21 = arith.extui %20 : i1 to i32
    %c0_i32_12 = arith.constant 0 : i32
    %22 = arith.cmpi ne, %21, %c0_i32_12 : i32
    scf.if %22 {
      %cst_19 = arith.constant 0.000000e+00 : f32
      %29 = vector.broadcast %cst_19 : f32 to vector<8x128xf32>
      %c0_20 = arith.constant 0 : index
      %c0_21 = arith.constant 0 : index
      %30 = vector.load %arg8[%c0_20, %c0_21] : memref<8x128xf32, #tpu.memory_space<vmem>>, vector<8x128xf32>
      tpu.vector_store %arg8[%c0_20, %c0_21], %29 {strides = array<i32>} : memref<8x128xf32, #tpu.memory_space<vmem>>, vector<8x128xf32>,
    } else {
    }
    %c0_13 = arith.constant 0 : index
    %c0_14 = arith.constant 0 : index
    %23 = vector.load %arg8[%c0_13, %c0_14] : memref<8x128xf32, #tpu.memory_space<vmem>>, vector<8x128xf32>
    %24 = arith.addf %23, %19 : vector<8x128xf32>
    %c0_15 = arith.constant 0 : index
    %c0_16 = arith.constant 0 : index
    %25 = vector.load %arg8[%c0_15, %c0_16] : memref<8x128xf32, #tpu.memory_space<vmem>>, vector<8x128xf32>
    tpu.vector_store %arg8[%c0_15, %c0_16], %24 {strides = array<i32>} : memref<8x128xf32, #tpu.memory_space<vmem>>, vector<8x128xf32>,
    %c0_i32_17 = arith.constant 0 : i32
    %26 = arith.cmpi eq, %arg1, %c0_i32_17 : i32
    %27 = arith.extui %26 : i1 to i32
    %c0_i32_18 = arith.constant 0 : i32
    %28 = arith.cmpi ne, %27, %c0_i32_18 : i32
    scf.if %28 {
      %c0_19 = arith.constant 0 : index
      %c0_20 = arith.constant 0 : index
      %29 = vector.load %arg8[%c0_19, %c0_20] : memref<8x128xf32, #tpu.memory_space<vmem>>, vector<8x128xf32>
      %cst_21 = arith.constant 2.500000e-01 : f32
      %30 = vector.broadcast %cst_21 : f32 to vector<8x128xf32>
      %31 = arith.mulf %29, %30 : vector<8x128xf32>
      %32 = arith.mulf %31, %31 : vector<8x128xf32>
      %cst_22 = arith.constant dense<0.000000e+00> : vector<8xf32>
      %33 = vector.multi_reduction <add>, %32, %cst_22 [1] : vector<8x128xf32> to vector<8xf32>
      %34 = vector.shape_cast %33 : vector<8xf32> to vector<8x1xf32>
      %cst_23 = arith.constant 1.000000e-24 : f32
      %35 = vector.broadcast %cst_23 : f32 to vector<8x1xf32>
      %36 = arith.maximumf %34, %35 : vector<8x1xf32>
      %37 = math.rsqrt %36 : vector<8x1xf32>
      %38 = vector.broadcast %37 : vector<8x1xf32> to vector<8x128xf32>
      %39 = arith.mulf %31, %38 : vector<8x128xf32>
      %c0_24 = arith.constant 0 : index
      %c0_25 = arith.constant 0 : index
      %40 = vector.load %arg8[%c0_24, %c0_25] : memref<8x128xf32, #tpu.memory_space<vmem>>, vector<8x128xf32>
      tpu.vector_store %arg8[%c0_24, %c0_25], %39 {strides = array<i32>} : memref<8x128xf32, #tpu.memory_space<vmem>>, vector<8x128xf32>,
    } else {
    }
    return
  }
  func.func @transform_0(%arg0: i32, %arg1: i32) -> (i32, i32) {
    %c0_i32 = arith.constant 0 : i32
    %c0_i32_0 = arith.constant 0 : i32
    return %arg0, %c0_i32 : i32, i32
  }
  func.func @transform_1(%arg0: i32, %arg1: i32) -> (i32, i32) {
    %c0_i32 = arith.constant 0 : i32
    %c0_i32_0 = arith.constant 0 : i32
    return %arg0, %c0_i32 : i32, i32
  }
  func.func @transform_2(%arg0: i32, %arg1: i32) -> (i32, i32) {
    %c0_i32 = arith.constant 0 : i32
    %c0_i32_0 = arith.constant 0 : i32
    return %c0_i32, %arg1 : i32, i32
  }
  func.func @transform_3(%arg0: i32, %arg1: i32) -> (i32, i32) {
    %c0_i32 = arith.constant 0 : i32
    %c0_i32_0 = arith.constant 0 : i32
    return %c0_i32, %arg1 : i32, i32
  }
  func.func @transform_4(%arg0: i32, %arg1: i32) -> (i32, i32) {
    %c0_i32 = arith.constant 0 : i32
    %c0_i32_0 = arith.constant 0 : i32
    return %c0_i32, %arg1 : i32, i32
  }
  func.func @transform_5(%arg0: i32, %arg1: i32) -> (i32, i32) {
    %c0_i32 = arith.constant 0 : i32
    %c0_i32_0 = arith.constant 0 : i32
    return %c0_i32, %arg1 : i32, i32
  }
  func.func @transform_6(%arg0: i32, %arg1: i32) -> (i32, i32) {
    %c0_i32 = arith.constant 0 : i32
    %c0_i32_0 = arith.constant 0 : i32
    return %arg0, %c0_i32 : i32, i32
  }
}

</mosaic_0001>

<bundles_post_ra>
// kernel: tpu_custom_call.1
= control target key start
LH: loop header
LB: loop body
LE: loop exit
PB: predicated region body
PF: predicated region fallthrough
CT: control target
= control target key end

     0   :  { %11 = vsyncpa [#allocation3], 0  ;;  %s615_s0 = inlined_call_operand.hbm [shape: f32[8,32], index: 0, kind: input, shape index: {}]   ;;  %s616_s1 = inlined_call_operand.hbm [shape: f32[8,32], index: 1, kind: input, shape index: {}]   ;;  %s617_s2 = inlined_call_operand.hbm [shape: f32[32,512], index: 2, kind: input, shape index: {}]   ;;  %s618_s3 = inlined_call_operand.hbm [shape: f32[1,512], index: 3, kind: input, shape index: {}]   ;;  %s619_s4 = inlined_call_operand.hbm [shape: f32[32,512], index: 4, kind: input, shape index: {}]   ;;  %s620_s5 = inlined_call_operand.vmem [shape: f32[1,512], index: 5, kind: input, shape index: {}]   ;;  %s621_s6 = inlined_call_operand.hbm [shape: f32[8,128], index: 6, kind: output, shape index: {}]  }
   0x1   :  { %12 = vsyncpa [#allocation6], 0 }
   0x2   :  { %13 = vsyncpa [#allocation9], 0  ;;  %s31_s23 = sshll.u32 %s616_s1, 4  ;;  %s32_s23 = int_to_ptr.hbm [resolvable:$true] %s31_s23 }
   0x3   :  { %14 = vsyncpa [#allocation4], 0  ;;  %s543_s24 = smov [#allocation5]   ;;  %s55_s28 = sshll.u32 %s618_s3, 4  ;;  %s56_s28 = int_to_ptr.hbm [resolvable:$true] %s55_s28 }
   0x4   :  { %s33_s25 = sshll.u32 %s543_s24, 4  ;;  %s544_s29 = smov [#allocation8]   ;;  %s34_s25 = int_to_ptr.vmem [resolvable:$true] %s33_s25 }
   0x5   :  { %36 = dma.hbm_to_vmem [thread:$0]  %s32_s23, 128, %s34_s25, [#allocation6]  }
   0x6   :  { %s57_s30 = sshll.u32 %s544_s29, 4  ;;  %s20_s9 = sshll.u32 %s615_s0, 4  ;;  %s58_s30 = int_to_ptr.vmem [resolvable:$true] %s57_s30  ;;  %s21_s9 = int_to_ptr.hbm [resolvable:$true] %s20_s9 }
   0x7   :  { %60 = dma.hbm_to_vmem [thread:$0]  %s56_s28, 64, %s58_s30, [#allocation9]  }
   0x8   :  { %s41_s11 = sshll.u32 %s617_s2, 4  ;;  %s545_s12 = smov [#allocation2]   ;;  %s42_s11 = int_to_ptr.hbm [resolvable:$true] %s41_s11 }
   0x9   :  { %s22_s13 = sshll.u32 %s545_s12, 4  ;;  %s546_s3 = smov [#allocation7]   ;;  %s23_s13 = int_to_ptr.vmem [resolvable:$true] %s22_s13 }
   0xa   :  { %25 = dma.hbm_to_vmem [thread:$0]  %s21_s9, 128, %s23_s13, [#allocation3]  }
   0xb   :  { %s43_s14 = sshll.u32 %s546_s3, 4  ;;  %s547_s15 = smov 512   ;;  %s44_s14 = int_to_ptr.vmem [resolvable:$true] %s43_s14 }
   0xc   :  { %s548_s16 = smov 32   ;;  %s65_s18 = sshll.u32 %s619_s4, 4  ;;  %s66_s18 = int_to_ptr.hbm [resolvable:$true] %s65_s18 }
   0xd   :  { %49 = dma.hbm_to_vmem [thread:$0]  %s42_s11, 2048, %s44_s14, [#allocation6], %s547_s15, %s547_s15, %s548_s16  }
   0xe   :  { %s549_s19 = smov [#allocation10]  }
   0xf   :  { %s67_s20 = sshll.u32 %s549_s19, 4  ;;  %s68_s20 = int_to_ptr.vmem [resolvable:$true] %s67_s20 }
  0x10   :  { %73 = dma.hbm_to_vmem [thread:$0]  %s66_s18, 2048, %s68_s20, [#allocation9], %s547_s15, %s547_s15, %s548_s16  }
  0x11   :  { %535 = dma.done.wait [#allocation3], 128  }
  0x12   :  { %536 = vsyncadd [#allocation3], 4294967168 }
  0x13   :  { %537 = dma.done.wait [#allocation6], 2176  }
  0x14   :  { %538 = vsyncadd [#allocation6], 4294965120 }
  0x15   :  { %539 = dma.done.wait [#allocation9], 2112  }
  0x16   :  { %540 = vsyncadd [#allocation9], 4294965184  ;;  %v109_v0 = vld [vmem:[#allocation7 + $0x60] sm:$0xff]  ;;  %v110_v1 = vld [vmem:[#allocation7 + $0x68] sm:$0xff]  ;;  %vm123_vm0 = vcmask 261120   ;;  %s360_s24 = sshll.u32 %s621_s6, 4  ;;  %s361_s24 = int_to_ptr.hbm [resolvable:$true] %s360_s24 }
  0x17   :  { %v111_v2 = vld [vmem:[#allocation7 + $0x70] sm:$0xff]  ;;  %139 = vmatpush.msra.mxu0 %v109_v0  ;;  %159 = vmatpush.msra.mxu1 %v110_v1  ;;  %v112_v3 = vld [vmem:[#allocation7 + $0x78] sm:$0xff]  ;;  %v105_v4 = vld [vmem:[#allocation7 + $0x40] sm:$0xff] }
  0x18   :  { %v106_v5 = vld [vmem:[#allocation7 + $0x48] sm:$0xff]  ;;  %179 = vmatpush.msra.mxu2 %v111_v2  ;;  %199 = vmatpush.msra.mxu3 %v112_v3  ;;  %v107_v6 = vld [vmem:[#allocation7 + $0x50] sm:$0xff]  ;;  %v108_v7 = vld [vmem:[#allocation7 + $0x58] sm:$0xff] }
  0x19   :  { %v101_v8 = vld [vmem:[#allocation7 + $0x20] sm:$0xff]  ;;  %140 = vmatpush.msra.mxu0 %v105_v4  ;;  %160 = vmatpush.msra.mxu1 %v106_v5  ;;  %v102_v9 = vld [vmem:[#allocation7 + $0x28] sm:$0xff]  ;;  %v103_v10 = vld [vmem:[#allocation7 + $0x30] sm:$0xff] }
  0x1a   :  { %v104_v11 = vld [vmem:[#allocation7 + $0x38] sm:$0xff]  ;;  %180 = vmatpush.msra.mxu2 %v107_v6  ;;  %200 = vmatpush.msra.mxu3 %v108_v7  ;;  %v97_v12 = vld [vmem:[#allocation7] sm:$0xff]  ;;  %v98_v13 = vld [vmem:[#allocation7 + $0x8] sm:$0xff] }
  0x1b   :  { %141 = vmatpush.msra.mxu0 %v101_v8  ;;  %161 = vmatpush.msra.mxu1 %v102_v9  ;;  %v99_v14 = vld [vmem:[#allocation7 + $0x10] sm:$0xff]  ;;  %v100_v15 = vld [vmem:[#allocation7 + $0x18] sm:$0xff]  ;;  %v220_v18 = vld [vmem:[#allocation10 + $0x60] sm:$0xff] }
  0x1c   :  { %181 = vmatpush.msra.mxu2 %v103_v10  ;;  %201 = vmatpush.msra.mxu3 %v104_v11  ;;  %v96_v16 = vld [vmem:[#allocation2] sm:$0xff]  ;;  %v223_v20 = vld [vmem:[#allocation10 + $0x78] sm:$0xff]  ;;  %v216_v22 = vld [vmem:[#allocation10 + $0x40] sm:$0xff] }
  0x1d   :  { %142 = vmatpush.msra.mxu0 %v97_v12  ;;  %162 = vmatpush.msra.mxu1 %v98_v13  ;;  %v222_v17 = vld [vmem:[#allocation10 + $0x70] sm:$0xff]  ;;  %v221_v19 = vld [vmem:[#allocation10 + $0x68] sm:$0xff]  ;;  %v219_v24 = vld [vmem:[#allocation10 + $0x58] sm:$0xff] }
  0x1e   :  { %182 = vmatpush.msra.mxu2 %v99_v14  ;;  %202 = vmatpush.msra.mxu3 %v100_v15  ;;  %v218_v21 = vld [vmem:[#allocation10 + $0x50] sm:$0xff]  ;;  %v217_v23 = vld [vmem:[#allocation10 + $0x48] sm:$0xff]  ;;  %v212_v26 = vld [vmem:[#allocation10 + $0x20] sm:$0xff] }
  0x1f   :  { %372 = vmatmul.msk.f32.vlgmr.msra.gmra.mxu0 %vm123_vm0, %v96_v16  ;;  %373 = vmatmul.msk.f32.vlgmr.msra.gmra.mxu1 %vm123_vm0, %v96_v16  ;;  %v214_v25 = vld [vmem:[#allocation10 + $0x30] sm:$0xff]  ;;  %v213_v27 = vld [vmem:[#allocation10 + $0x28] sm:$0xff]  ;;  %v215_v28 = vld [vmem:[#allocation10 + $0x38] sm:$0xff] }
  0x20   :  { %374 = vmatmul.msk.f32.vlgmr.msra.gmra.mxu2 %vm123_vm0, %v96_v16  ;;  %375 = vmatmul.msk.f32.vlgmr.msra.gmra.mxu3 %vm123_vm0, %v96_v16  ;;  %v210_v29 = vld [vmem:[#allocation10 + $0x10] sm:$0xff]  ;;  %v208_v30 = vld [vmem:[#allocation10] sm:$0xff]  ;;  %v209_v31 = vld [vmem:[#allocation10 + $0x8] sm:$0xff] }
  0x21   :  { %289 = vmatpush.msrb.mxu2 %v222_v17  ;;  %249 = vmatpush.msrb.mxu0 %v220_v18  ;;  %v211_v32 = vld [vmem:[#allocation10 + $0x18] sm:$0xff]  ;;  %v224_v36 = vld [vmem:[%s620_s5] sm:$0xf]  ;;  %s550_s5 = smov [#allocation11]  }
  0x22   :  { %269 = vmatpush.msrb.mxu1 %v221_v19  ;;  %309 = vmatpush.msrb.mxu3 %v223_v20  ;;  %v207_v33 = vld [vmem:[#allocation5] sm:$0xff]  ;;  %v113_v37 = vld [vmem:[#allocation8] sm:$0xf]  ;;  %v226_v40 = vperm.slane %v224_v36, 0  ;;  %v227_v41 = vperm.slane %v224_v36, 1  ;;  %v228_v51 = vperm.slane %v224_v36, 2 }
  0x23   :  { %290 = vmatpush.msrb.mxu2 %v218_v21  ;;  %250 = vmatpush.msrb.mxu0 %v216_v22  ;;  %v115_v42 = vperm.slane %v113_v37, 0  ;;  %v116_v43 = vperm.slane %v113_v37, 1  ;;  %v117_v48 = vperm.slane %v113_v37, 2  ;;  %v229_v52 = vperm.slane %v224_v36, 3  ;;  %s358_s21 = sshll.u32 %s550_s5, 4  ;;  %s359_s21 = int_to_ptr.vmem [resolvable:$true] %s358_s21 }
  0x24   :  { %270 = vmatpush.msrb.mxu1 %v217_v23  ;;  %310 = vmatpush.msrb.mxu3 %v219_v24  ;;  %v118_v53 = vperm.slane %v113_v37, 3 }
  0x25   :  { %291 = vmatpush.msrb.mxu2 %v214_v25  ;;  %251 = vmatpush.msrb.mxu0 %v212_v26 }
  0x26   :  { %271 = vmatpush.msrb.mxu1 %v213_v27  ;;  %311 = vmatpush.msrb.mxu3 %v215_v28 }
  0x27   :  { %292 = vmatpush.msrb.mxu2 %v210_v29  ;;  %252 = vmatpush.msrb.mxu0 %v208_v30 }
  0x28   :  { %272 = vmatpush.msrb.mxu1 %v209_v31  ;;  %312 = vmatpush.msrb.mxu3 %v211_v32 }
  0x29   :  { %376 = vmatmul.msk.f32.vlgmr.msrb.gmra.mxu0 %vm123_vm0, %v207_v33  ;;  %377 = vmatmul.msk.f32.vlgmr.msrb.gmra.mxu1 %vm123_vm0, %v207_v33 }
  0x2a   :  { %378 = vmatmul.msk.f32.vlgmr.msrb.gmra.mxu2 %vm123_vm0, %v207_v33  ;;  %379 = vmatmul.msk.f32.vlgmr.msrb.gmra.mxu3 %vm123_vm0, %v207_v33 }
  0x9c   :  { %v144_v34 = vpop.f32.mrf.mxu0  ;;  %v164_v35 = vpop.f32.mrf.mxu1 }
  0x9d   :  { %v145_v49 = vadd.f32 %v144_v34, %v115_v42  ;;  %v165_v50 = vadd.f32 %v164_v35, %v116_v43 }
  0xa3   :  { %v184_v38 = vpop.f32.mrf.mxu2  ;;  %v204_v39 = vpop.f32.mrf.mxu3 }
  0xa4   :  { %v185_v58 = vadd.f32 %v184_v38, %v117_v48  ;;  %v205_v61 = vadd.f32 %v204_v39, %v118_v53 }
  0xa6   :  { %v254_v44 = vpop.f32.mrf.mxu0  ;;  %v274_v45 = vpop.f32.mrf.mxu1 }
  0xa7   :  { %v255_v46 = vadd.f32 %v254_v44, %v226_v40  ;;  %v275_v47 = vadd.f32 %v274_v45, %v227_v41 }
  0xa9   :  { %v317_v54 = vmul.f32 %v255_v46, %v145_v49  ;;  %v318_v55 = vmul.f32 %v275_v47, %v165_v50 }
  0xab   :  { %v321_v62 = vadd.f32 %v318_v55, %v317_v54 }
  0xad   :  { %v294_v56 = vpop.f32.mrf.mxu2  ;;  %v314_v57 = vpop.f32.mrf.mxu3 }
  0xae   :  { %v295_v59 = vadd.f32 %v294_v56, %v228_v51  ;;  %v315_v60 = vadd.f32 %v314_v57, %v229_v52 }
  0xb0   :  { %v319_v63 = vmul.f32 %v295_v59, %v185_v58  ;;  %v320_v1 = vmul.f32 %v315_v60, %v205_v61 }
  0xb2   :  { %v322_v0 = vadd.f32 %v321_v62, %v319_v63 }
  0xb4   :  { %v323_v2 = vadd.f32 %v322_v0, %v320_v1 }
  0xb6   :  { %v336_v3 = vmul.f32 0.25, %v323_v2 }
  0xb8   :  { %v337_v4 = vmul.f32 %v336_v3, %v336_v3 }
  0xba   :  { %338 = vadd.xlane.f32.xlu0 %v337_v4 }
 0x12d   :  { %v339_v5 = vpop.xlane.xlu0 %338 }
 0x12e   :  { %v340_v6 = vmax.f32 %v339_v5, 1e-24 }
 0x130   :  { %389 = vrsqrt.f32 %v340_v6  ;;  %vm347_vm2 = vweird.f32 %v340_v6 }
 0x136   :  { %v390_v7 = vpop.eup %389 }
 0x137   :  { %v342_v8 = vmul.f32 %v390_v7, %v340_v6  ;;  %vm348_vm1 = vweird.f32 %v390_v7 }
 0x138   :  { %vm349_vm3 = vmor %vm347_vm2, %vm348_vm1 }
 0x139   :  { %v343_v9 = vmul.f32 %v390_v7, %v342_v8 }
 0x13b   :  { %v344_v10 = vmul.f32 0.5, %v343_v9 }
 0x13d   :  { %v345_v11 = vsub.f32 1.5, %v344_v10 }
 0x13f   :  { %v346_v12 = vmul.f32 %v390_v7, %v345_v11 }
 0x141   :  { %v350_v13 = vsel %vm349_vm3, %v390_v7, %v346_v12 }
 0x142   :  { %v351_v14 = vmul.f32 %v350_v13, %v336_v3 }
 0x144   :  { %352 = vst [vmem:[#allocation11] sm:$0xff] %v351_v14 }
 0x145   :  { %363 = dma.vmem_to_hbm [thread:$0]  %s359_s21, 128, %s361_s24, [#allocation4]  }
 0x146   :  { %541 = dma.done.wait [#allocation4], 128  }
 0x147   :  { %542 = vsyncadd [#allocation4], 4294967168 }
 0x148   :  { %368 = vsyncpa [#allocation3], 1 }
 0x149   :  { %369 = vsyncpa [#allocation6], 1 }
 0x14a   :  { %370 = vsyncpa [#allocation9], 1 }
 0x14b   :  { %371 = vsyncpa [#allocation4], 1 }

</bundles_post_ra>
